<compile_context>
chip_gen: v5e
topology: v5e:2x2
jax: 0.10.0
libtpu: 0.0.40
codegen_flags: <defaults>
</compile_context>

<pallas_src>
import functools

import jax
import jax.numpy as jnp
from jax import lax
from jax.experimental import pallas as pl
from jax.experimental.pallas import tpu as pltpu


def _round_up(x, m):
    return ((x + m - 1) // m) * m


def mos_head_kernel(x_ref, w1_ref, b1_ref, w2_ref, b2_ref, o_ref, acc_ref, *, T, tile_t):
    """One (batch element, frame tile) grid point.

    x_ref  : (tile_t, D) bf16 SSL feature rows for the current batch element.
    w1_ref : (D, H) bf16 (resident), b1_ref / w2_ref: (1, H) f32, b2_ref: (1, 1) f32 SMEM.
    o_ref  : (1, 1) f32 utterance MOS, written on the last frame tile.
    acc_ref: (1, 1) f32 running frame-score sum for the current batch element.
    """
    t = pl.program_id(1)

    @pl.when(t == 0)
    def _init():
        acc_ref[...] = jnp.zeros_like(acc_ref)

    # Linear(D -> H) on the MXU: bf16 operands, f32 accumulate.
    # (nn.Dropout(0.3) is identity at inference.)
    h = jnp.dot(x_ref[...], w1_ref[...], preferred_element_type=jnp.float32)
    h = jnp.maximum(h + b1_ref[...], 0.0)                                  # (tile_t, H) f32

    # Linear(H -> 1) as a VPU multiply + lane reduction (avoids an N=1 MXU matmul).
    s = jnp.sum(h * w2_ref[...], axis=-1, keepdims=True) + b2_ref[0, 0]    # (tile_t, 1)

    # mos_clip: tanh(.) * 2 + 3
    s = jnp.tanh(s) * 2.0 + 3.0

    # Mask zero-padded frames in the (possibly partial) last tile.
    rows = t * tile_t + lax.broadcasted_iota(jnp.int32, (tile_t, 1), 0)
    s = jnp.where(rows < T, s, 0.0)

    acc_ref[...] += jnp.sum(s, axis=0, keepdims=True)                      # (1, 1)

    @pl.when(t == pl.num_programs(1) - 1)
    def _finalize():
        o_ref[...] = acc_ref[...] * (1.0 / T)


def mos_predictor_head(ssl_feature, w1, b1, w2, b2, *, tile_t=512):
    """ssl_feature: [B, T, D] float32 -> [B, 1] utterance MOS scores."""
    B, T, D = ssl_feature.shape
    H = w1.shape[1]

    tile_t = min(tile_t, _round_up(T, 8))
    t_pad = _round_up(T, tile_t)
    num_t_tiles = t_pad // tile_t

    # bf16 feature / W1 stream halves HBM traffic of the dominant read; the matmul
    # still accumulates in f32. Everything after the first matmul stays f32.
    x = ssl_feature.astype(jnp.bfloat16)
    if t_pad != T:
        x = jnp.pad(x, ((0, 0), (0, t_pad - T), (0, 0)))
    w1_bf = w1.astype(jnp.bfloat16)
    b1_row = b1.reshape(1, H).astype(jnp.float32)
    w2_row = w2.reshape(1, H).astype(jnp.float32)
    b2_s = b2.reshape(1, 1).astype(jnp.float32)

    kernel = functools.partial(mos_head_kernel, T=T, tile_t=tile_t)
    out = pl.pallas_call(
        kernel,
        out_shape=jax.ShapeDtypeStruct((B, 1, 1), jnp.float32),
        grid_spec=pltpu.PrefetchScalarGridSpec(
            num_scalar_prefetch=0,
            grid=(B, num_t_tiles),
            in_specs=[
                pl.BlockSpec((None, tile_t, D), lambda b, t: (b, t, 0)),   # features (tiled)
                pl.BlockSpec((D, H), lambda b, t: (0, 0)),                 # W1 (resident)
                pl.BlockSpec((1, H), lambda b, t: (0, 0)),                 # b1
                pl.BlockSpec((1, H), lambda b, t: (0, 0)),                 # W2 as a row
                pl.BlockSpec(memory_space=pltpu.MemorySpace.SMEM),         # b2 scalar
            ],
            out_specs=pl.BlockSpec((None, 1, 1), lambda b, t: (b, 0, 0)),
            scratch_shapes=[pltpu.VMEM((1, 1), jnp.float32)],
        ),
        compiler_params=pltpu.CompilerParams(
            dimension_semantics=("parallel", "arbitrary")),
    )(x, w1_bf, b1_row, w2_row, b2_s)
    return out.reshape(B, 1)


def fake_ssl_features(audio, audio_length, w_feat):
    """Stand-in for the S3PRL wavlm_base SSL upstream.

    audio: [B, 1, T_samples], audio_length: [B].
    Returns deterministic features [B, T_frames, 768] (hop = w_feat.shape[0] = 320).
    """
    # TODO(synk): real S3PRL SSL upstream (wavlm_base transformer) has no Pallas
    # equivalent; replaced by deterministic frame-stacking + linear projection.
    del audio_length  # torch.mean in MOS_Predictor also averages over all frames.
    B = audio.shape[0]
    wav = jnp.squeeze(audio, axis=1)                     # [B, T_samples]
    hop, d = w_feat.shape
    T = wav.shape[1] // hop
    frames = wav[:, : T * hop].reshape(B, T, hop)        # [B, T, hop]
    return jnp.einsum("bth,hd->btd", frames, w_feat)     # [B, T, d]


def mos_predictor_forward(audio, audio_length, params):
    ssl_feat = fake_ssl_features(audio, audio_length, params["w_feat"])
    return mos_predictor_head(
        ssl_feat, params["w1"], params["b1"], params["w2"], params["b2"]
    )


def _reference_head(ssl_feature, w1, b1, w2, b2):
    """Pure-JAX reference of the projection head (same bf16 feature path as the kernel)."""
    h = jnp.dot(ssl_feature.astype(jnp.bfloat16), w1.astype(jnp.bfloat16),
                preferred_element_type=jnp.float32)
    h = jnp.maximum(h + b1[0], 0.0)
    s = jnp.tanh(h @ w2 + b2[0]) * 2.0 + 3.0             # [B, T, 1]
    return jnp.mean(s, axis=1)                           # [B, 1]


if __name__ == "__main__":
    # wavlm_base: SSL_OUT_DIM=768, head hidden_dim=64. T=12 exercises the padded /
    # masked final frame tile.
    B, T, HOP, D, H = 2, 12, 320, 768, 64
    key = jax.random.PRNGKey(0)
    k_audio, k_wf, k_w1, k_b1, k_w2, k_b2 = jax.random.split(key, 6)

    audio = jax.random.normal(k_audio, (B, 1, T * HOP), dtype=jnp.float32)
    audio_length = jnp.full((B,), T * HOP, dtype=jnp.int32)

    params = {
        "w_feat": jax.random.normal(k_wf, (HOP, D), dtype=jnp.float32) * 0.02,
        "w1": jax.random.normal(k_w1, (D, H), dtype=jnp.float32) * 0.05,
        "b1": jax.random.normal(k_b1, (1, H), dtype=jnp.float32) * 0.01,
        "w2": jax.random.normal(k_w2, (H, 1), dtype=jnp.float32) * 0.05,
        "b2": jax.random.normal(k_b2, (1, 1), dtype=jnp.float32) * 0.01,
    }

    out = mos_predictor_forward(audio, audio_length, params)
    out = jax.block_until_ready(out)
    assert out.shape == (B, 1), out.shape

    ssl_feat = fake_ssl_features(audio, audio_length, params["w_feat"])
    ref = _reference_head(ssl_feat, params["w1"], params["b1"],
                          params["w2"], params["b2"])
    assert jnp.allclose(out, ref, atol=5e-3, rtol=5e-3), (out, ref)

    print("KERNEL_OK")
</pallas_src>

<mosaic_0001>
module attributes {stable_mosaic.version = 11 : i64} {
  func.func @mos_head_kernel(%arg0: i32, %arg1: i32, %arg2: memref<1x16x768xbf16, #tpu.memory_space<vmem>>, %arg3: memref<768x64xbf16, #tpu.memory_space<vmem>>, %arg4: memref<1x64xf32, #tpu.memory_space<vmem>>, %arg5: memref<1x64xf32, #tpu.memory_space<vmem>>, %arg6: memref<1x1xf32, #tpu.memory_space<smem>>, %arg7: memref<1x1x1xf32, #tpu.memory_space<vmem>>, %arg8: memref<1x1xf32, #tpu.memory_space<vmem>>) attributes {dimension_semantics = [#tpu.dimension_semantics<parallel>, #tpu.dimension_semantics<arbitrary>], iteration_bounds = array<i64: 2, 1>, scalar_prefetch = 0 : i64, scratch_operands = 1 : i64, tpu.core_type = #tpu.core_type<tc>, window_params = [{transform_indices = @transform_0, window_bounds = array<i64: 1, 16, 768>}, {pipeline_mode = #tpu.pipeline_mode<synchronous>, transform_indices = @transform_1, window_bounds = array<i64: 768, 64>}, {pipeline_mode = #tpu.pipeline_mode<synchronous>, transform_indices = @transform_2, window_bounds = array<i64: 1, 64>}, {pipeline_mode = #tpu.pipeline_mode<synchronous>, transform_indices = @transform_3, window_bounds = array<i64: 1, 64>}, {transform_indices = @transform_4, window_bounds = array<i64: 1, 1>}, {transform_indices = @transform_5, window_bounds = array<i64: 1, 1, 1>}]} {
    %c0_i32 = arith.constant 0 : i32
    %0 = arith.cmpi eq, %arg1, %c0_i32 : i32
    %1 = arith.extui %0 : i1 to i32
    %c0_i32_0 = arith.constant 0 : i32
    %2 = arith.cmpi ne, %1, %c0_i32_0 : i32
    scf.if %2 {
      %cst_23 = arith.constant 0.000000e+00 : f32
      %41 = vector.broadcast %cst_23 : f32 to vector<1x1xf32>
      %c0_24 = arith.constant 0 : index
      %c0_25 = arith.constant 0 : index
      %42 = vector.load %arg8[%c0_24, %c0_25] : memref<1x1xf32, #tpu.memory_space<vmem>>, vector<1x1xf32>
      tpu.vector_store %arg8[%c0_24, %c0_25], %41 {strides = array<i32>} : memref<1x1xf32, #tpu.memory_space<vmem>>, vector<1x1xf32>,
    } else {
    }
    %c0 = arith.constant 0 : index
    %c0_1 = arith.constant 0 : index
    %c0_2 = arith.constant 0 : index
    %3 = vector.load %arg2[%c0, %c0_1, %c0_2] : memref<1x16x768xbf16, #tpu.memory_space<vmem>>, vector<1x16x768xbf16>
    %4 = vector.shape_cast %3 : vector<1x16x768xbf16> to vector<16x768xbf16>
    %c0_3 = arith.constant 0 : index
    %c0_4 = arith.constant 0 : index
    %5 = vector.load %arg3[%c0_3, %c0_4] : memref<768x64xbf16, #tpu.memory_space<vmem>>, vector<768x64xbf16>
    %cst = arith.constant dense<0.000000e+00> : vector<16x64xf32>
    %6 = tpu.matmul %4, %5, %cst {dimension_numbers = #tpu.dot_dimension_numbers<[1], [0], [0], [1], [0, 0, 1, 1], [], []>} : vector<16x768xbf16>, vector<768x64xbf16>, vector<16x64xf32> -> vector<16x64xf32>
    %c0_5 = arith.constant 0 : index
    %c0_6 = arith.constant 0 : index
    %7 = vector.load %arg4[%c0_5, %c0_6] : memref<1x64xf32, #tpu.memory_space<vmem>>, vector<1x64xf32>
    %8 = vector.broadcast %7 : vector<1x64xf32> to vector<16x64xf32>
    %9 = arith.addf %6, %8 : vector<16x64xf32>
    %cst_7 = arith.constant 0.000000e+00 : f32
    %10 = vector.broadcast %cst_7 : f32 to vector<16x64xf32>
    %11 = arith.maximumf %9, %10 : vector<16x64xf32>
    %c0_8 = arith.constant 0 : index
    %c0_9 = arith.constant 0 : index
    %12 = vector.load %arg5[%c0_8, %c0_9] : memref<1x64xf32, #tpu.memory_space<vmem>>, vector<1x64xf32>
    %13 = vector.broadcast %12 : vector<1x64xf32> to vector<16x64xf32>
    %14 = arith.mulf %11, %13 : vector<16x64xf32>
    %cst_10 = arith.constant dense<0.000000e+00> : vector<16xf32>
    %15 = vector.multi_reduction <add>, %14, %cst_10 [1] : vector<16x64xf32> to vector<16xf32>
    %16 = vector.shape_cast %15 : vector<16xf32> to vector<16x1xf32>
    %c0_11 = arith.constant 0 : index
    %c0_12 = arith.constant 0 : index
    %17 = memref.load %arg6[%c0_11, %c0_12] : memref<1x1xf32, #tpu.memory_space<smem>>
    %18 = vector.broadcast %17 : f32 to vector<16x1xf32>
    %19 = arith.addf %16, %18 : vector<16x1xf32>
    %20 = math.tanh %19 : vector<16x1xf32>
    %cst_13 = arith.constant 2.000000e+00 : f32
    %21 = vector.broadcast %cst_13 : f32 to vector<16x1xf32>
    %22 = arith.mulf %20, %21 : vector<16x1xf32>
    %cst_14 = arith.constant 3.000000e+00 : f32
    %23 = vector.broadcast %cst_14 : f32 to vector<16x1xf32>
    %24 = arith.addf %22, %23 : vector<16x1xf32>
    %c16_i32 = arith.constant 16 : i32
    %25 = arith.muli %arg1, %c16_i32 : i32
    %26 = tpu.iota {dimensions = array<i32: 0>} : vector<16x1xi32>
    %27 = vector.broadcast %25 : i32 to vector<16x1xi32>
    %28 = arith.addi %27, %26 : vector<16x1xi32>
    %c12_i32 = arith.constant 12 : i32
    %29 = vector.broadcast %c12_i32 : i32 to vector<16x1xi32>
    %30 = arith.cmpi slt, %28, %29 : vector<16x1xi32>
    %cst_15 = arith.constant 0.000000e+00 : f32
    %31 = vector.broadcast %cst_15 : f32 to vector<16x1xf32>
    %32 = arith.select %30, %24, %31 : vector<16x1xi1>, vector<16x1xf32>
    %c0_16 = arith.constant 0 : index
    %c0_17 = arith.constant 0 : index
    %33 = vector.load %arg8[%c0_16, %c0_17] : memref<1x1xf32, #tpu.memory_space<vmem>>, vector<1x1xf32>
    %cst_18 = arith.constant dense<0.000000e+00> : vector<1xf32>
    %34 = vector.multi_reduction <add>, %32, %cst_18 [0] : vector<16x1xf32> to vector<1xf32>
    %35 = vector.shape_cast %34 : vector<1xf32> to vector<1x1xf32>
    %36 = arith.addf %33, %35 : vector<1x1xf32>
    %c0_19 = arith.constant 0 : index
    %c0_20 = arith.constant 0 : index
    %37 = vector.load %arg8[%c0_19, %c0_20] : memref<1x1xf32, #tpu.memory_space<vmem>>, vector<1x1xf32>
    tpu.vector_store %arg8[%c0_19, %c0_20], %36 {strides = array<i32>} : memref<1x1xf32, #tpu.memory_space<vmem>>, vector<1x1xf32>,
    %c0_i32_21 = arith.constant 0 : i32
    %38 = arith.cmpi eq, %arg1, %c0_i32_21 : i32
    %39 = arith.extui %38 : i1 to i32
    %c0_i32_22 = arith.constant 0 : i32
    %40 = arith.cmpi ne, %39, %c0_i32_22 : i32
    scf.if %40 {
      %c0_23 = arith.constant 0 : index
      %c0_24 = arith.constant 0 : index
      %41 = vector.load %arg8[%c0_23, %c0_24] : memref<1x1xf32, #tpu.memory_space<vmem>>, vector<1x1xf32>
      %cst_25 = arith.constant 0.0833333358 : f32
      %42 = vector.broadcast %cst_25 : f32 to vector<1x1xf32>
      %43 = arith.mulf %41, %42 : vector<1x1xf32>
      %c0_26 = arith.constant 0 : index
      %c0_27 = arith.constant 0 : index
      %c0_28 = arith.constant 0 : index
      %44 = vector.load %arg7[%c0_26, %c0_27, %c0_28] : memref<1x1x1xf32, #tpu.memory_space<vmem>>, vector<1x1x1xf32>
      %45 = vector.shape_cast %44 : vector<1x1x1xf32> to vector<1x1xf32>
      %46 = vector.shape_cast %43 : vector<1x1xf32> to vector<1x1x1xf32>
      tpu.vector_store %arg7[%c0_26, %c0_27, %c0_28], %46 {strides = array<i32>} : memref<1x1x1xf32, #tpu.memory_space<vmem>>, vector<1x1x1xf32>,
    } else {
    }
    return
  }
  func.func @transform_0(%arg0: i32, %arg1: i32) -> (i32, i32, i32) {
    %c0_i32 = arith.constant 0 : i32
    %c0_i32_0 = arith.constant 0 : i32
    return %arg0, %arg1, %c0_i32 : i32, i32, i32
  }
  func.func @transform_1(%arg0: i32, %arg1: i32) -> (i32, i32) {
    %c0_i32 = arith.constant 0 : i32
    %c0_i32_0 = arith.constant 0 : i32
    %c0_i32_1 = arith.constant 0 : i32
    return %c0_i32, %c0_i32_0 : i32, i32
  }
  func.func @transform_2(%arg0: i32, %arg1: i32) -> (i32, i32) {
    %c0_i32 = arith.constant 0 : i32
    %c0_i32_0 = arith.constant 0 : i32
    %c0_i32_1 = arith.constant 0 : i32
    return %c0_i32, %c0_i32_0 : i32, i32
  }
  func.func @transform_3(%arg0: i32, %arg1: i32) -> (i32, i32) {
    %c0_i32 = arith.constant 0 : i32
    %c0_i32_0 = arith.constant 0 : i32
    %c0_i32_1 = arith.constant 0 : i32
    return %c0_i32, %c0_i32_0 : i32, i32
  }
  func.func @transform_4(%arg0: i32, %arg1: i32) -> (i32, i32) {
    %c0_i32 = arith.constant 0 : i32
    %c0_i32_0 = arith.constant 0 : i32
    %c0_i32_1 = arith.constant 0 : i32
    return %c0_i32, %c0_i32_0 : i32, i32
  }
  func.func @transform_5(%arg0: i32, %arg1: i32) -> (i32, i32, i32) {
    %c0_i32 = arith.constant 0 : i32
    %c0_i32_0 = arith.constant 0 : i32
    %c0_i32_1 = arith.constant 0 : i32
    return %arg0, %c0_i32, %c0_i32_0 : i32, i32, i32
  }
}

</mosaic_0001>

<bundles_post_ra>
// kernel: tpu_custom_call.1
= control target key start
LH: loop header
LB: loop body
LE: loop exit
PB: predicated region body
PF: predicated region fallthrough
CT: control target
= control target key end

     0   :  { %s1252_s20 = smov 0   ;;  %s1254_s21 = smov 0   ;;  %s1460_s0 = inlined_call_operand.vmem [shape: bf16[2,16,768], index: 0, kind: input, shape index: {}]   ;;  %s1461_s1 = inlined_call_operand.vmem [shape: bf16[768,64], index: 1, kind: input, shape index: {}]   ;;  %s1462_s2 = inlined_call_operand.vmem [shape: f32[1,64], index: 2, kind: input, shape index: {}]   ;;  %s1463_s3 = inlined_call_operand.vmem [shape: f32[1,64], index: 3, kind: input, shape index: {}]   ;;  %s1464_s4 = inlined_call_operand.<no memory space> [shape: f32[1,1], index: 4, kind: input, shape index: {}]   ;;  %s1465_s5 = inlined_call_operand.vmem [shape: f32[2,1,1], index: 5, kind: output, shape index: {}]  }
   0x1   :  { %10 = sst [smem:[#allocation3]] %s1464_s4  ;;  %s1256_s22 = smov 0  }
   0x2 LB: > { %s28_s4 = sadd.s32 1, %s1212_s21  ;;  %p888_p0 = scmp.ge.s32.totalorder %s1216_s22, 1  ;;  %s1216_s22 = sphi %s1256_s22, %s16_s22   ;;  %s1212_s21 = sphi %s1254_s21, %s1467_s21   ;;  %s1208_s20 = sphi %s1252_s20, %s1466_s20  }
   0x3   : > { %p30_p1 = scmp.ge.s32.totalorder %s28_s4, 2  ;;  %p208_p2 = scmp.lt.s32.totalorder %s1216_s22, 3 }
   0x5   : > { %s1469_s4 = smov (%p30_p1, %s28_s4), 0  ;;  %p209_p3 = pnand %p888_p0, %p208_p2 }
   0x6   : > { %p240_p4 = scmp.lt.s32.totalorder (!%p209_p3), %s1208_s20, 1  ;;  %s782_s15 = sld [smem:[#allocation3]] (!%p209_p3) }
   0x7   : > { %212 = sbr.rel (%p209_p3) target bundleno = 383 (0x17f), region = 40 }
   0xc   : > { %v1121_v0 = vld [vmem:[%s1461_s1 + $0x38] sm:$0xff]  ;;  %v1120_v4 = vld [vmem:[%s1461_s1 + $0x30] sm:$0xff]  ;;  %v1119_v8 = vld [vmem:[%s1461_s1 + $0x28] sm:$0xff]  ;;  %s1471_s20 = smov (!%p240_p4, %s1208_s20), 1  ;;  %vm775_vm0 = vcmask 523264   ;;  %vm257_vm1 = vcmask 0  }
   0xd   : > { %v1129_v1 = vld [vmem:[%s1461_s1 + $0x78] sm:$0xff]  ;;  %683 = vmatpush.bf16.msra.mxu0 %v1121_v0  ;;  %v1128_v5 = vld [vmem:[%s1461_s1 + $0x70] sm:$0xff]  ;;  %v1127_v9 = vld [vmem:[%s1461_s1 + $0x68] sm:$0xff]  ;;  %s1162_s27 = smul.u32 48, %s1471_s20  ;;  %s252_s18 = scalar_lea.vmem %s1465_s5, %s1471_s20 }
   0xe   : > { %v1137_v2 = vld [vmem:[%s1461_s1 + $0xb8] sm:$0xff]  ;;  %697 = vmatpush.bf16.msra.mxu1 %v1129_v1  ;;  %v1136_v6 = vld [vmem:[%s1461_s1 + $0xb0] sm:$0xff]  ;;  %v1135_v10 = vld [vmem:[%s1461_s1 + $0xa8] sm:$0xff] }
   0xf   : > { %v1145_v3 = vld [vmem:[%s1461_s1 + $0xf8] sm:$0xff]  ;;  %711 = vmatpush.bf16.msra.mxu2 %v1137_v2  ;;  %v1144_v7 = vld [vmem:[%s1461_s1 + $0xf0] sm:$0xff]  ;;  %v1143_v11 = vld [vmem:[%s1461_s1 + $0xe8] sm:$0xff]  ;;  %s1364_s13 = scalar_lea.vmem %s1460_s0, %s1162_s27 }
  0x10   : > { %725 = vmatpush.bf16.msra.mxu3 %v1145_v3  ;;  %v1118_v12 = vld [vmem:[%s1461_s1 + $0x20] sm:$0xff]  ;;  %v1117_v16 = vld [vmem:[%s1461_s1 + $0x18] sm:$0xff]  ;;  %v1116_v20 = vld [vmem:[%s1461_s1 + $0x10] sm:$0xff] }
  0x11   : > { %684 = vmatpush.bf16.msra.mxu0 %v1120_v4  ;;  %v1126_v13 = vld [vmem:[%s1461_s1 + $0x60] sm:$0xff]  ;;  %v1125_v17 = vld [vmem:[%s1461_s1 + $0x58] sm:$0xff]  ;;  %v1124_v21 = vld [vmem:[%s1461_s1 + $0x50] sm:$0xff] }
  0x12   : > { %698 = vmatpush.bf16.msra.mxu1 %v1128_v5  ;;  %v1134_v14 = vld [vmem:[%s1461_s1 + $0xa0] sm:$0xff]  ;;  %v1133_v18 = vld [vmem:[%s1461_s1 + $0x98] sm:$0xff]  ;;  %v1132_v22 = vld [vmem:[%s1461_s1 + $0x90] sm:$0xff] }
  0x13   : > { %712 = vmatpush.bf16.msra.mxu2 %v1136_v6  ;;  %v1142_v15 = vld [vmem:[%s1461_s1 + $0xe0] sm:$0xff]  ;;  %v1141_v19 = vld [vmem:[%s1461_s1 + $0xd8] sm:$0xff]  ;;  %v1140_v23 = vld [vmem:[%s1461_s1 + $0xd0] sm:$0xff] }
  0x14   : > { %726 = vmatpush.bf16.msra.mxu3 %v1144_v7  ;;  %v1115_v24 = vld [vmem:[%s1461_s1 + $0x8] sm:$0xff]  ;;  %v1114_v28 = vld [vmem:[%s1461_s1] sm:$0xff]  ;;  %v1111_v31 = vld [vmem:[%s1364_s13 + $0x14] sm:$0xf0] }
  0x15   : > { %685 = vmatpush.bf16.msra.mxu0 %v1119_v8  ;;  %v1123_v25 = vld [vmem:[%s1461_s1 + $0x48] sm:$0xff]  ;;  %v1122_v29 = vld [vmem:[%s1461_s1 + $0x40] sm:$0xff]  ;;  %v894_v33 = vld [vmem:[%s1364_s13 + $0x18] sm:$0xf0] }
  0x16   : > { %699 = vmatpush.bf16.msra.mxu1 %v1127_v9  ;;  %v1131_v26 = vld [vmem:[%s1461_s1 + $0x88] sm:$0xff]  ;;  %v892_v30 = vld [vmem:[%s1364_s13] sm:$0xf]  ;;  %v1108_v32 = vld [vmem:[%s1364_s13 + $0x4] sm:$0xf] }
  0x17   : > { %713 = vmatpush.bf16.msra.mxu2 %v1135_v10  ;;  %v1139_v27 = vld [vmem:[%s1461_s1 + $0xc8] sm:$0xff]  ;;  %v1153_v34 = vld [vmem:[%s1461_s1 + $0x138] sm:$0xff]  ;;  %v1130_v36 = vld [vmem:[%s1461_s1 + $0x80] sm:$0xff]  ;;  %v893_v40 = vor.u32 %v1111_v31, %v892_v30  ;;  %v897_v43 = vor.u32 %v1108_v32, %v894_v33 }
  0x18   : > { %727 = vmatpush.bf16.msra.mxu3 %v1143_v11  ;;  %v1161_v35 = vld [vmem:[%s1461_s1 + $0x178] sm:$0xff]  ;;  %v1138_v37 = vld [vmem:[%s1461_s1 + $0xc0] sm:$0xff]  ;;  %v900_v38 = vld [vmem:[%s1364_s13 + $0x8] sm:$0xf] }
  0x19   : > { %686 = vmatpush.bf16.msra.mxu0 %v1118_v12  ;;  %v1112_v39 = vld [vmem:[%s1364_s13 + $0x1c] sm:$0xf0]  ;;  %v1109_v41 = vld [vmem:[%s1364_s13 + $0xc] sm:$0xf]  ;;  %v902_v42 = vld [vmem:[%s1364_s13 + $0x20] sm:$0xf0] }
  0x1a   : > { %700 = vmatpush.bf16.msra.mxu1 %v1126_v13  ;;  %v1152_v44 = vld [vmem:[%s1461_s1 + $0x130] sm:$0xff]  ;;  %v901_v46 = vor.u32 %v1112_v39, %v900_v38  ;;  %v905_v47 = vor.u32 %v1109_v41, %v902_v42  ;;  %v1151_v48 = vld [vmem:[%s1461_s1 + $0x128] sm:$0xff]  ;;  %v1150_v50 = vld [vmem:[%s1461_s1 + $0x120] sm:$0xff]  ;;  %v793_v38 = vlaneseq }
  0x1b   : > { %714 = vmatpush.bf16.msra.mxu2 %v1134_v14  ;;  %v1160_v45 = vld [vmem:[%s1461_s1 + $0x170] sm:$0xff]  ;;  %v1159_v49 = vld [vmem:[%s1461_s1 + $0x168] sm:$0xff]  ;;  %v1158_v51 = vld [vmem:[%s1461_s1 + $0x160] sm:$0xff] }
  0x1c   : > { %728 = vmatpush.bf16.msra.mxu3 %v1142_v15  ;;  %v1149_v52 = vld [vmem:[%s1461_s1 + $0x118] sm:$0xff]  ;;  %v1148_v54 = vld [vmem:[%s1461_s1 + $0x110] sm:$0xff]  ;;  %v1147_v56 = vld [vmem:[%s1461_s1 + $0x108] sm:$0xff]  ;;  %v794_v42 = vshrl.u32 %v793_v38, 7 }
  0x1d   : > { %687 = vmatpush.bf16.msra.mxu0 %v1117_v16  ;;  %v1157_v53 = vld [vmem:[%s1461_s1 + $0x158] sm:$0xff]  ;;  %v1156_v55 = vld [vmem:[%s1461_s1 + $0x150] sm:$0xff]  ;;  %v1155_v57 = vld [vmem:[%s1461_s1 + $0x148] sm:$0xff] }
  0x1e   : > { %701 = vmatpush.bf16.msra.mxu1 %v1125_v17  ;;  %v1146_v58 = vld [vmem:[%s1461_s1 + $0x100] sm:$0xff]  ;;  %v908_v60 = vld [vmem:[%s1364_s13 + $0x10] sm:$0xf]  ;;  %v1113_v61 = vld [vmem:[%s1364_s13 + $0x24] sm:$0xf0] }
  0x1f   : > { %715 = vmatpush.bf16.msra.mxu2 %v1133_v18  ;;  %v1154_v59 = vld [vmem:[%s1461_s1 + $0x140] sm:$0xff]  ;;  %v1110_v62 = vld [vmem:[%s1364_s13 + $0x14] sm:$0xf]  ;;  %v910_v63 = vld [vmem:[%s1364_s13 + $0x28] sm:$0xf0]  ;;  %v909_v0 = vor.u32 %v1113_v61, %v908_v60 }
  0x20   : > { %729 = vmatpush.bf16.msra.mxu3 %v1141_v19  ;;  %v913_v1 = vor.u32 %v1110_v62, %v910_v63  ;;  %v1188_v5 = vld [vmem:[%s1462_s2] ss:$0 sm:$0xff] }
  0x21   : > { %688 = vmatpush.bf16.msra.mxu0 %v1116_v20 }
  0x22   : > { %702 = vmatpush.bf16.msra.mxu1 %v1124_v21 }
  0x23   : > { %716 = vmatpush.bf16.msra.mxu2 %v1132_v22 }
  0x24   : > { %730 = vmatpush.bf16.msra.mxu3 %v1140_v23 }
  0x25   : > { %689 = vmatpush.bf16.msra.mxu0 %v1115_v24 }
  0x26   : > { %703 = vmatpush.bf16.msra.mxu1 %v1123_v25 }
  0x27   : > { %717 = vmatpush.bf16.msra.mxu2 %v1131_v26 }
  0x28   : > { %731 = vmatpush.bf16.msra.mxu3 %v1139_v27 }
  0x29   : > { %690 = vmatpush.bf16.msra.mxu0 %v1114_v28  ;;  %v1189_v28 = vld [vmem:[%s1463_s3] ss:$0 sm:$0xff] }
  0x2a   : > { %704 = vmatpush.bf16.msra.mxu1 %v1122_v29 }
  0x2b   : > { %718 = vmatpush.bf16.msra.mxu2 %v1130_v36 }
  0x2c   : > { %732 = vmatpush.bf16.msra.mxu3 %v1138_v37  ;;  %691 = vmatmul.bf16.vlgmr.msra.gmra.mxu0 %v893_v40 }
  0x2d   : > { %739 = vmatpush.bf16.msrb.mxu0 %v1153_v34  ;;  %705 = vmatmul.bf16.vlgmr.msra.gmra.mxu1 %v897_v43  ;;  %v1218_v34 = vmov 0.0  }
  0x2e   : > { %753 = vmatpush.bf16.msrb.mxu1 %v1161_v35  ;;  %719 = vmatmul.bf16.vlgmr.msra.gmra.mxu2 %v901_v46  ;;  %258 = vst.msk [vmem:[#allocation2] sm:$0x1] %vm257_vm1, %v1218_v34  ;;  %v783_v35 = vstv %s782_s15 }
  0x2f   : > { %733 = vmatmul.bf16.vlgmr.msra.gmra.mxu3 %v905_v47 }
  0x31   : > { %740 = vmatpush.bf16.msrb.mxu0 %v1152_v44  ;;  %v795_v44 = vadd.s32 8, %v794_v42 }
  0x32   : > { %754 = vmatpush.bf16.msrb.mxu1 %v1160_v45 }
  0x33   : > { %vm800_vm2 = vcmp.lt.s32.totalorder %v795_v44, 12 }
  0x35   : > { %741 = vmatpush.bf16.msrb.mxu0 %v1151_v48 }
  0x36   : > { %755 = vmatpush.bf16.msrb.mxu1 %v1159_v49 }
  0x39   : > { %742 = vmatpush.bf16.msrb.mxu0 %v1150_v50 }
  0x3a   : > { %756 = vmatpush.bf16.msrb.mxu1 %v1158_v51 }
  0x3d   : > { %743 = vmatpush.bf16.msrb.mxu0 %v1149_v52 }
  0x3e   : > { %757 = vmatpush.bf16.msrb.mxu1 %v1157_v53 }
  0x41   : > { %744 = vmatpush.bf16.msrb.mxu0 %v1148_v54 }
  0x42   : > { %758 = vmatpush.bf16.msrb.mxu1 %v1156_v55 }
  0x45   : > { %745 = vmatpush.bf16.msrb.mxu0 %v1147_v56  ;;  %v803_v56 = vld [vmem:[#allocation2] sm:$0x1] }
  0x46   : > { %759 = vmatpush.bf16.msrb.mxu1 %v1155_v57 }
  0x49   : > { %746 = vmatpush.bf16.msrb.mxu0 %v1146_v58 }
  0x4a   : > { %760 = vmatpush.bf16.msrb.mxu1 %v1154_v59 }
  0x4c   : > { %747 = vmatmul.bf16.vlgmr.msrb.gmra.mxu0 %v909_v0 }
  0x4d   : > { %761 = vmatmul.bf16.vlgmr.msrb.gmra.mxu1 %v913_v1 }
  0xa9   : > { %v692_v2 = vpop.f32.mrf.mxu0 }
  0xaa   : > { %v706_v3 = vpop.f32.mrf.mxu1  ;;  %v693_v9 = vadd.f32 %v1188_v5, %v692_v2 }
  0xac   : > { %v707_v11 = vadd.f32 %v706_v3, %v693_v9 }
  0xb1   : > { %v720_v4 = vpop.f32.mrf.mxu2  ;;  %v694_v6 = vpop.f32.mrf.mxu0 }
  0xb2   : > { %v708_v7 = vpop.f32.mrf.mxu1  ;;  %v734_v8 = vpop.f32.mrf.mxu3  ;;  %v695_v10 = vadd.f32 %v1188_v5, %v694_v6  ;;  %v721_v16 = vadd.f32 %v720_v4, %v707_v11 }
  0xb4   : > { %v709_v12 = vadd.f32 %v708_v7, %v695_v10  ;;  %v735_v19 = vadd.f32 %v734_v8, %v721_v16 }
  0xb9   : > { %v722_v13 = vpop.f32.mrf.mxu2 }
  0xba   : > { %v723_v17 = vadd.f32 %v722_v13, %v709_v12  ;;  %v736_v18 = vpop.f32.mrf.mxu3 }
  0xbc   : > { %v737_v20 = vadd.f32 %v736_v18, %v723_v17 }
  0xc9   : > { %v748_v14 = vpop.f32.mrf.mxu0 }
  0xca   : > { %v762_v15 = vpop.f32.mrf.mxu1  ;;  %v749_v22 = vadd.f32 %v748_v14, %v735_v19 }
  0xcc   : > { %v763_v26 = vadd.f32 %v762_v15, %v749_v22 }
  0xce   : > { %v767_v30 = vmax.f32 %v763_v26, 0.0 }
  0xd0   : > { %v773_v32 = vmul.f32 %v1189_v28, %v767_v30 }
  0xd1   : > { %v750_v21 = vpop.f32.mrf.mxu0 }
  0xd2   : > { %v751_v23 = vadd.f32 %v750_v21, %v737_v20  ;;  %v764_v24 = vpop.f32.mrf.mxu1  ;;  %v776_v33 = vsel %vm775_vm0, %v773_v32, 0.0 }
  0xd4   : > { %v765_v25 = vadd.f32 %v764_v24, %v751_v23 }
  0xd6   : > { %v768_v27 = vmax.f32 %v765_v25, 0.0 }
  0xd8   : > { %v774_v29 = vmul.f32 %v1189_v28, %v768_v27 }
  0xda   : > { %v779_v31 = vsel %vm775_vm0, %v774_v29, 0.0 }
  0xdb   : > { %780 = vadd.xlane.f32.xlu0 %v779_v31 }
  0xe3   : > { %777 = vadd.xlane.f32.xlu0 %v776_v33 }
 0x14e   : > { %v781_v36 = vpop.xlane.xlu0 %780 }
 0x14f   : > { %v785_v37 = vadd.f32 %v783_v35, %v781_v36 }
 0x151   : > { %1190 = vtanh.f32 %v785_v37 }
 0x156   : > { %v778_v39 = vpop.xlane.xlu0 %777 }
 0x157   : > { %v784_v40 = vadd.f32 %v783_v35, %v778_v39  ;;  %v1191_v41 = vpop.eup %1190 }
 0x158   : > { %v789_v43 = vmul.f32 2.0, %v1191_v41 }
 0x159   : > { %1192 = vtanh.f32 %v784_v40 }
 0x15a   : > { %v791_v46 = vadd.f32 3.0, %v789_v43 }
 0x15c   : > { %v802_v49 = vsel %vm800_vm2, %v791_v46, 0.0 }
 0x15f   : > { %v1193_v45 = vpop.eup %1192 }
 0x160   : > { %v788_v47 = vmul.f32 2.0, %v1193_v45 }
 0x162   : > { %v790_v48 = vadd.f32 3.0, %v788_v47 }
 0x164   : > { %v804_v50 = vadd.f32 %v802_v49, %v790_v48 }
 0x166   : > { %v805_v51 = vrot.slane %v804_v50, 4 }
 0x168   : > { %v806_v52 = vadd.f32 %v805_v51, %v804_v50 }
 0x16a   : > { %v807_v53 = vrot.slane %v806_v52, 2 }
 0x16c   : > { %v808_v54 = vadd.f32 %v807_v53, %v806_v52 }
 0x16e   : > { %v809_v55 = vrot.slane %v808_v54, 1 }
 0x170   : > { %v810_v57 = vadd.f32 %v809_v55, %v808_v54 }
 0x172   : > { %v811_v58 = vadd.f32 %v810_v57, %v803_v56 }
 0x174   : > { %813 = vst.msk [vmem:[#allocation2] sm:$0x1] %vm257_vm1, %v811_v58 }
 0x17b   : > { %v817_v59 = vld [vmem:[#allocation2] sm:$0x1] }
 0x17c   : > { %v818_v60 = vmul.f32 0.083333336, %v817_v59 }
 0x17e   : > { %819 = vst.msk [vmem:[%s252_s18] sm:$0x1] %vm257_vm1, %v818_v60 }
 0x17f PF: > { %s16_s22 = sadd.s32 1, %s1216_s22   ;;  %s1466_s20 = smov %s1212_s21 }
 0x180   : > { %p13_p5 = scmp.ge.s32.totalorder %s16_s22, 4   ;;  %s1467_s21 = smov %s1469_s4 }
 0x182   :  { %15 = sbr.rel (!%p13_p5) target bundleno = 2 (0x2), region = 78 }

</bundles_post_ra>
